<compile_context>
chip_gen: v5e
topology: v5e:2x2
jax: 0.10.0
libtpu: 0.0.40
codegen_flags: <defaults>
</compile_context>

<pallas_src>
import math
from functools import partial

import jax
import jax.numpy as jnp
from jax.experimental import pallas as pl
from jax.experimental.pallas import tpu as pltpu

# ----------------------------- configuration ------------------------------
N_NODES = 8            # nodes per graph
N_EDGES = 16           # directed ring, both directions (in-degree 2)
IN_DIM = 32
OUT_DIM = 32
NUM_HEADS = 4
BATCH = 8              # graphs per forward
GRAPHS_PER_BLOCK = 4   # graphs per grid step -> grid=(2,) keeps 2 parallel steps (v7x megacore)
BN_EPS = 1e-5


# ----------------------------- Pallas kernel -------------------------------
def _gt_layer_kernel(x_ref, src_oh_ref, dst_oh_ref, dst_oh_t_ref,
                     w_qkve_ref, block_ones_ref, o_w_ref, ffn1_w_ref, ffn2_w_ref,
                     pvec_ref, out_ref, *, num_gnodes, out_dim, scale):
    f32 = jnp.float32
    bf16 = jnp.bfloat16
    hd = out_dim
    gn = num_gnodes

    x = x_ref[0]                               # [G*(N+E), in_dim] bf16 (nodes rows first)
    src_oh = src_oh_ref[0]                     # [G*E, G*N] bf16 block-diagonal
    dst_oh = dst_oh_ref[0]                     # [G*E, G*N]
    dst_oh_t = dst_oh_t_ref[0]                 # [G*N, G*E]

    # ---- fused Q|K|V|E projection: one lane-dense [in_dim, 4*hd]=[32,128] MXU pass ----
    proj = jnp.dot(x, w_qkve_ref[...], preferred_element_type=f32)      # [G*(N+E), 4*hd] f32
    q = proj[:gn, 0:hd].astype(bf16)                                    # [G*N, hd]  (dst side)
    kv = proj[:gn, hd:3 * hd].astype(bf16)                              # [G*N, 2*hd] (K|V, src side)
    e_proj = proj[gn:, 3 * hd:4 * hd]                                   # [G*E, hd]  f32

    # ---- edge-list attention, all heads + all graphs of the block vectorized ----
    kv_e = jnp.dot(src_oh, kv, preferred_element_type=f32)              # [G*E, 2*hd]
    q_e = jnp.dot(dst_oh, q, preferred_element_type=f32)                # [G*E, hd]
    k_e = kv_e[:, :hd]
    v_e = kv_e[:, hd:]

    # score = (K_src * Q_dst) / sqrt(D) * E     (src_dot_dst + scaling + imp_exp_attn)
    score = k_e * q_e * scale * e_proj                                  # [G*E, hd] f32

    # fused per-head sum + per-head broadcast (block-diag ones matmul), then exp(clip)
    s_bcast = jnp.dot(score.astype(bf16), block_ones_ref[...],
                      preferred_element_type=f32)                       # [G*E, hd]
    soft_hd = jnp.exp(jnp.clip(s_bcast, -5.0, 5.0))

    # fused wV / z aggregation at destination nodes: one matmul, split lanes afterwards
    agg = jnp.concatenate([soft_hd * v_e, soft_hd], axis=1).astype(bf16)  # [G*E, 2*hd]
    wvz = jnp.dot(dst_oh_t, agg, preferred_element_type=f32)            # [G*N, 2*hd]
    wv = wvz[:, :hd]
    z = wvz[:, hd:]
    h_attn = wv * pl.reciprocal(z + 1e-6, approx=True)                  # divide on the EUP slot

    # ---- packed small parameters (one [2, 4*hd] f32 buffer) ----
    p = pvec_ref[...]
    o_b = p[0:1, 0:hd]
    bn1_s = p[0:1, hd:2 * hd]
    bn1_b = p[0:1, 2 * hd:3 * hd]
    ffn2_b = p[0:1, 3 * hd:4 * hd]
    bn2_s = p[1:2, 0:hd]
    bn2_b = p[1:2, hd:2 * hd]
    ffn1_b = p[1:2, 2 * hd:4 * hd]

    # ---- O projection + residual + BatchNorm1d (eval, folded scale/shift) ----
    h_in1 = x[:gn, :].astype(f32)
    h1 = jnp.dot(h_attn.astype(bf16), o_w_ref[...], preferred_element_type=f32) + o_b
    h1 = h_in1 + h1
    h1 = h1 * bn1_s + bn1_b

    # ---- FFN + residual + BatchNorm1d ----
    t = jnp.dot(h1.astype(bf16), ffn1_w_ref[...], preferred_element_type=f32) + ffn1_b
    t = jnp.maximum(t, 0.0)
    t = jnp.dot(t.astype(bf16), ffn2_w_ref[...], preferred_element_type=f32) + ffn2_b
    h2 = h1 + t
    h2 = h2 * bn2_s + bn2_b

    out_ref[0] = h2


# ------------------------------ spec helpers --------------------------------
def _batched_spec(shape):
    nrest = len(shape) - 1
    return pl.BlockSpec((1,) + tuple(shape[1:]),
                        lambda g, _n=nrest: (g,) + (0,) * _n)


def _shared_spec(shape):
    nd = len(shape)
    return pl.BlockSpec(tuple(shape), lambda g, _n=nd: (0,) * _n)


# ------------------------------ layer wrapper -------------------------------
def graph_transformer_layer(params, h, e, edge_src, edge_dst, graphs_per_block=GRAPHS_PER_BLOCK):
    """GraphTransformerLayer.forward (full_graph=False, batch_norm=True, residual=True,
    use_bias=False, dropout=0).  Batched over graphs, G graphs per grid step.
    Returns (h_out, e) -- e is passed through unchanged (as in the reference module)."""
    f32 = jnp.float32
    bf16 = jnp.bfloat16
    b, n, in_dim = h.shape
    n_edges = e.shape[1]
    out_dim = params["O_w"].shape[1]
    head_dim = out_dim // NUM_HEADS

    g = min(graphs_per_block, b)
    assert b % g == 0, "batch must be divisible by graphs_per_block"
    nb = b // g
    gn, ge = g * n, g * n_edges

    # ---- batched operands: G graphs stacked per grid step (node rows, then edge rows) ----
    x_all = jnp.concatenate(
        [h.astype(f32).reshape(nb, gn, in_dim),
         e.astype(f32).reshape(nb, ge, in_dim)], axis=1).astype(bf16)     # [nb, G*(N+E), in]

    # Block-diagonal one-hot gather/scatter operands (exact in bf16).
    # NOTE: these grow O(G^2); at much larger G cap it (or raise vmem_limit_bytes /
    # switch to a scalar-prefetch row gather), especially on v7x's 64 MiB VMEM.
    goff = (jnp.arange(b, dtype=jnp.int32) % g) * n
    src_g = (edge_src.astype(jnp.int32) + goff[:, None]).reshape(nb, ge)
    dst_g = (edge_dst.astype(jnp.int32) + goff[:, None]).reshape(nb, ge)
    src_oh = jax.nn.one_hot(src_g, gn, dtype=bf16)                        # [nb, G*E, G*N]
    dst_oh = jax.nn.one_hot(dst_g, gn, dtype=bf16)                        # [nb, G*E, G*N]
    dst_oh_t = jnp.swapaxes(dst_oh, 1, 2)                                 # [nb, G*N, G*E]

    # ---- shared (grid-invariant) operands: built once, VMEM-resident across steps ----
    w_qkve = jnp.concatenate([params["Q_w"], params["K_w"],
                              params["V_w"], params["E_w"]], axis=1).astype(bf16)   # [in, 4*out]

    block_ones = jnp.kron(jnp.eye(NUM_HEADS, dtype=f32),
                          jnp.ones((head_dim, head_dim), f32)).astype(bf16)          # [out, out]

    def bn_fold(bp):                                                      # eval-mode BN -> scale/shift
        s = bp["weight"] / jnp.sqrt(bp["var"] + BN_EPS)
        return s.astype(f32), (bp["bias"] - bp["mean"] * s).astype(f32)

    bn1_s, bn1_b = bn_fold(params["bn1"])
    bn2_s, bn2_b = bn_fold(params["bn2"])
    # Coalesce the 7 small vectors into ONE lane-dense [2, 4*out_dim] f32 buffer.
    pvec = jnp.stack([
        jnp.concatenate([params["O_b"], bn1_s, bn1_b, params["ffn2_b"]]),
        jnp.concatenate([bn2_s, bn2_b, params["ffn1_b"]]),
    ]).astype(f32)

    inputs = (
        x_all, src_oh, dst_oh, dst_oh_t,
        w_qkve, block_ones,
        params["O_w"].astype(bf16),
        params["ffn1_w"].astype(bf16), params["ffn2_w"].astype(bf16),
        pvec,
    )

    in_specs = ([_batched_spec(a.shape) for a in inputs[:4]]
                + [_shared_spec(a.shape) for a in inputs[4:]])

    kernel = partial(_gt_layer_kernel, num_gnodes=gn, out_dim=out_dim,
                     scale=1.0 / math.sqrt(head_dim))

    out = pl.pallas_call(
        kernel,
        grid=(nb,),
        in_specs=in_specs,
        out_specs=pl.BlockSpec((1, gn, out_dim), lambda i: (i, 0, 0)),
        out_shape=jax.ShapeDtypeStruct((nb, gn, out_dim), f32),
        compiler_params=pltpu.CompilerParams(dimension_semantics=("parallel",)),
    )(*inputs)

    return out.reshape(b, n, out_dim), e


# --------------------------- pure-JAX reference ------------------------------
_HI = jax.lax.Precision.HIGHEST


def gt_layer_reference(params, h, e, edge_src, edge_dst, num_heads=NUM_HEADS):
    out_dim = params["O_w"].shape[1]
    d = out_dim // num_heads

    def bn(x, p):
        return (x - p["mean"]) / jnp.sqrt(p["var"] + BN_EPS) * p["weight"] + p["bias"]

    def one_graph(hb, eb, sb, db):
        nn_ = hb.shape[0]
        q = jnp.dot(hb, params["Q_w"], precision=_HI)
        k = jnp.dot(hb, params["K_w"], precision=_HI)
        v = jnp.dot(hb, params["V_w"], precision=_HI)
        ep = jnp.dot(eb, params["E_w"], precision=_HI)
        ke = k[sb].reshape(-1, num_heads, d)
        qe = q[db].reshape(-1, num_heads, d)
        ve = v[sb].reshape(-1, num_heads, d)
        eh = ep.reshape(-1, num_heads, d)
        score = ke * qe / math.sqrt(d) * eh
        soft = jnp.exp(jnp.clip(jnp.sum(score, axis=-1), -5.0, 5.0))            # [E, H]
        wv = jax.ops.segment_sum(soft[:, :, None] * ve, db, num_segments=nn_)   # [N, H, D]
        z = jax.ops.segment_sum(soft, db, num_segments=nn_)                     # [N, H]
        h_attn = (wv / (z[:, :, None] + 1e-6)).reshape(nn_, out_dim)
        x = jnp.dot(h_attn, params["O_w"], precision=_HI) + params["O_b"]
        x = hb + x
        x = bn(x, params["bn1"])
        y = jnp.maximum(jnp.dot(x, params["ffn1_w"], precision=_HI) + params["ffn1_b"], 0.0)
        y = jnp.dot(y, params["ffn2_w"], precision=_HI) + params["ffn2_b"]
        y = x + y
        return bn(y, params["bn2"])

    h_out = jnp.stack([one_graph(h[g], e[g], edge_src[g], edge_dst[g])
                       for g in range(h.shape[0])])
    return h_out, e


# ------------------------------ param init -----------------------------------
def init_gt_layer_params(key, in_dim, out_dim):
    """PyTorch-default-like init (nn.Linear: U(+-1/sqrt(fan_in)); BN near identity)."""
    ks = jax.random.split(key, 12)

    def lin_w(k, fan_in, fan_out):
        bound = 1.0 / math.sqrt(fan_in)
        return jax.random.uniform(k, (fan_in, fan_out), jnp.float32, -bound, bound)

    def lin_b(k, fan_in, fan_out):
        bound = 1.0 / math.sqrt(fan_in)
        return jax.random.uniform(k, (fan_out,), jnp.float32, -bound, bound)

    def bn_init(k, dd):
        kw, kb, km, kv = jax.random.split(k, 4)
        return dict(weight=1.0 + 0.05 * jax.random.normal(kw, (dd,), jnp.float32),
                    bias=0.05 * jax.random.normal(kb, (dd,), jnp.float32),
                    mean=0.1 * jax.random.normal(km, (dd,), jnp.float32),
                    var=1.0 + 0.1 * jax.random.uniform(kv, (dd,), jnp.float32))

    return dict(
        Q_w=lin_w(ks[0], in_dim, out_dim), K_w=lin_w(ks[1], in_dim, out_dim),
        V_w=lin_w(ks[2], in_dim, out_dim), E_w=lin_w(ks[3], in_dim, out_dim),
        O_w=lin_w(ks[4], out_dim, out_dim), O_b=lin_b(ks[5], out_dim, out_dim),
        ffn1_w=lin_w(ks[6], out_dim, 2 * out_dim), ffn1_b=lin_b(ks[7], out_dim, 2 * out_dim),
        ffn2_w=lin_w(ks[8], 2 * out_dim, out_dim), ffn2_b=lin_b(ks[9], 2 * out_dim, out_dim),
        bn1=bn_init(ks[10], out_dim), bn2=bn_init(ks[11], out_dim),
    )


# --------------------------------- main ---------------------------------------
if __name__ == "__main__":
    key = jax.random.PRNGKey(0)
    kp1, kp2, kh, ke = jax.random.split(key, 4)

    params1 = init_gt_layer_params(kp1, IN_DIM, OUT_DIM)
    params2 = init_gt_layer_params(kp2, OUT_DIM, OUT_DIM)

    h = jax.random.normal(kh, (BATCH, N_NODES, IN_DIM), jnp.float32)
    e = jax.random.normal(ke, (BATCH, N_EDGES, IN_DIM), jnp.float32)

    fwd = jnp.arange(N_NODES, dtype=jnp.int32)
    src = jnp.concatenate([fwd, (fwd + 1) % N_NODES])
    dst = jnp.concatenate([(fwd + 1) % N_NODES, fwd])
    edge_src = jnp.tile(src[None, :], (BATCH, 1))
    edge_dst = jnp.tile(dst[None, :], (BATCH, 1))

    layer = jax.jit(partial(graph_transformer_layer, graphs_per_block=GRAPHS_PER_BLOCK))
    h1, e1 = layer(params1, h, e, edge_src, edge_dst)
    h2, e2 = layer(params2, h1, e1, edge_src, edge_dst)
    h2 = jax.block_until_ready(h2)

    # correctness vs. a pure-JAX per-edge reference of the DGL message passing
    # (kernel uses bf16 MXU operands with f32 accumulation -> 5e-2 tolerance)
    r1, _ = gt_layer_reference(params1, h, e, edge_src, edge_dst)
    r2, _ = gt_layer_reference(params2, r1, e, edge_src, edge_dst)

    assert h2.shape == (BATCH, N_NODES, OUT_DIM)
    assert bool(jnp.all(jnp.isfinite(h2)))
    max_err = float(jnp.max(jnp.abs(h2 - r2)))
    assert bool(jnp.allclose(h2, r2, rtol=5e-2, atol=5e-2)), max_err
    print("KERNEL_OK")
</pallas_src>

<mosaic_0001>
module attributes {stable_mosaic.version = 11 : i64} {
  func.func @_gt_layer_kernel(%arg0: i32, %arg1: memref<1x96x32xbf16, #tpu.memory_space<vmem>>, %arg2: memref<1x64x32xbf16, #tpu.memory_space<vmem>>, %arg3: memref<1x64x32xbf16, #tpu.memory_space<vmem>>, %arg4: memref<1x32x64xbf16, #tpu.memory_space<vmem>>, %arg5: memref<32x128xbf16, #tpu.memory_space<vmem>>, %arg6: memref<32x32xbf16, #tpu.memory_space<vmem>>, %arg7: memref<32x32xbf16, #tpu.memory_space<vmem>>, %arg8: memref<32x64xbf16, #tpu.memory_space<vmem>>, %arg9: memref<64x32xbf16, #tpu.memory_space<vmem>>, %arg10: memref<2x128xf32, #tpu.memory_space<vmem>>, %arg11: memref<1x32x32xf32, #tpu.memory_space<vmem>>) attributes {dimension_semantics = [#tpu.dimension_semantics<parallel>], iteration_bounds = array<i64: 2>, scalar_prefetch = 0 : i64, scratch_operands = 0 : i64, tpu.core_type = #tpu.core_type<tc>, window_params = [{transform_indices = @transform_0, window_bounds = array<i64: 1, 96, 32>}, {transform_indices = @transform_1, window_bounds = array<i64: 1, 64, 32>}, {transform_indices = @transform_2, window_bounds = array<i64: 1, 64, 32>}, {transform_indices = @transform_3, window_bounds = array<i64: 1, 32, 64>}, {pipeline_mode = #tpu.pipeline_mode<synchronous>, transform_indices = @transform_4, window_bounds = array<i64: 32, 128>}, {pipeline_mode = #tpu.pipeline_mode<synchronous>, transform_indices = @transform_5, window_bounds = array<i64: 32, 32>}, {pipeline_mode = #tpu.pipeline_mode<synchronous>, transform_indices = @transform_6, window_bounds = array<i64: 32, 32>}, {pipeline_mode = #tpu.pipeline_mode<synchronous>, transform_indices = @transform_7, window_bounds = array<i64: 32, 64>}, {pipeline_mode = #tpu.pipeline_mode<synchronous>, transform_indices = @transform_8, window_bounds = array<i64: 64, 32>}, {pipeline_mode = #tpu.pipeline_mode<synchronous>, transform_indices = @transform_9, window_bounds = array<i64: 2, 128>}, {transform_indices = @transform_10, window_bounds = array<i64: 1, 32, 32>}]} {
    %c0 = arith.constant 0 : index
    %c0_0 = arith.constant 0 : index
    %c0_1 = arith.constant 0 : index
    %0 = vector.load %arg1[%c0, %c0_0, %c0_1] : memref<1x96x32xbf16, #tpu.memory_space<vmem>>, vector<1x96x32xbf16>
    %1 = vector.shape_cast %0 : vector<1x96x32xbf16> to vector<96x32xbf16>
    %c0_2 = arith.constant 0 : index
    %c0_3 = arith.constant 0 : index
    %c0_4 = arith.constant 0 : index
    %2 = vector.load %arg2[%c0_2, %c0_3, %c0_4] : memref<1x64x32xbf16, #tpu.memory_space<vmem>>, vector<1x64x32xbf16>
    %3 = vector.shape_cast %2 : vector<1x64x32xbf16> to vector<64x32xbf16>
    %c0_5 = arith.constant 0 : index
    %c0_6 = arith.constant 0 : index
    %c0_7 = arith.constant 0 : index
    %4 = vector.load %arg3[%c0_5, %c0_6, %c0_7] : memref<1x64x32xbf16, #tpu.memory_space<vmem>>, vector<1x64x32xbf16>
    %5 = vector.shape_cast %4 : vector<1x64x32xbf16> to vector<64x32xbf16>
    %c0_8 = arith.constant 0 : index
    %c0_9 = arith.constant 0 : index
    %c0_10 = arith.constant 0 : index
    %6 = vector.load %arg4[%c0_8, %c0_9, %c0_10] : memref<1x32x64xbf16, #tpu.memory_space<vmem>>, vector<1x32x64xbf16>
    %7 = vector.shape_cast %6 : vector<1x32x64xbf16> to vector<32x64xbf16>
    %c0_11 = arith.constant 0 : index
    %c0_12 = arith.constant 0 : index
    %8 = vector.load %arg5[%c0_11, %c0_12] : memref<32x128xbf16, #tpu.memory_space<vmem>>, vector<32x128xbf16>
    %cst = arith.constant dense<0.000000e+00> : vector<96x128xf32>
    %9 = tpu.matmul %1, %8, %cst {dimension_numbers = #tpu.dot_dimension_numbers<[1], [0], [0], [1], [0, 0, 1, 1], [], []>} : vector<96x32xbf16>, vector<32x128xbf16>, vector<96x128xf32> -> vector<96x128xf32>
    %10 = vector.extract_strided_slice %9 {offsets = [0, 0], sizes = [32, 32], strides = [1, 1]} : vector<96x128xf32> to vector<32x32xf32>
    %11 = arith.truncf %10 : vector<32x32xf32> to vector<32x32xbf16>
    %12 = vector.extract_strided_slice %9 {offsets = [0, 32], sizes = [32, 64], strides = [1, 1]} : vector<96x128xf32> to vector<32x64xf32>
    %13 = arith.truncf %12 : vector<32x64xf32> to vector<32x64xbf16>
    %14 = vector.extract_strided_slice %9 {offsets = [32, 96], sizes = [64, 32], strides = [1, 1]} : vector<96x128xf32> to vector<64x32xf32>
    %cst_13 = arith.constant dense<0.000000e+00> : vector<64x64xf32>
    %15 = tpu.matmul %3, %13, %cst_13 {dimension_numbers = #tpu.dot_dimension_numbers<[1], [0], [0], [1], [0, 0, 1, 1], [], []>} : vector<64x32xbf16>, vector<32x64xbf16>, vector<64x64xf32> -> vector<64x64xf32>
    %cst_14 = arith.constant dense<0.000000e+00> : vector<64x32xf32>
    %16 = tpu.matmul %5, %11, %cst_14 {dimension_numbers = #tpu.dot_dimension_numbers<[1], [0], [0], [1], [0, 0, 1, 1], [], []>} : vector<64x32xbf16>, vector<32x32xbf16>, vector<64x32xf32> -> vector<64x32xf32>
    %17 = vector.extract_strided_slice %15 {offsets = [0, 0], sizes = [64, 32], strides = [1, 1]} : vector<64x64xf32> to vector<64x32xf32>
    %18 = vector.extract_strided_slice %15 {offsets = [0, 32], sizes = [64, 32], strides = [1, 1]} : vector<64x64xf32> to vector<64x32xf32>
    %19 = arith.mulf %17, %16 : vector<64x32xf32>
    %cst_15 = arith.constant 0.353553385 : f32
    %20 = vector.broadcast %cst_15 : f32 to vector<64x32xf32>
    %21 = arith.mulf %19, %20 : vector<64x32xf32>
    %22 = arith.mulf %21, %14 : vector<64x32xf32>
    %23 = arith.truncf %22 : vector<64x32xf32> to vector<64x32xbf16>
    %c0_16 = arith.constant 0 : index
    %c0_17 = arith.constant 0 : index
    %24 = vector.load %arg6[%c0_16, %c0_17] : memref<32x32xbf16, #tpu.memory_space<vmem>>, vector<32x32xbf16>
    %cst_18 = arith.constant dense<0.000000e+00> : vector<64x32xf32>
    %25 = tpu.matmul %23, %24, %cst_18 {dimension_numbers = #tpu.dot_dimension_numbers<[1], [0], [0], [1], [0, 0, 1, 1], [], []>} : vector<64x32xbf16>, vector<32x32xbf16>, vector<64x32xf32> -> vector<64x32xf32>
    %cst_19 = arith.constant -5.000000e+00 : f32
    %cst_20 = arith.constant 5.000000e+00 : f32
    %26 = vector.broadcast %cst_19 : f32 to vector<64x32xf32>
    %27 = arith.maximumf %26, %25 : vector<64x32xf32>
    %28 = vector.broadcast %cst_20 : f32 to vector<64x32xf32>
    %29 = arith.minimumf %28, %27 : vector<64x32xf32>
    %30 = math.exp %29 : vector<64x32xf32>
    %31 = arith.mulf %30, %18 : vector<64x32xf32>
    %32 = tpu.concatenate %31, %30 in 1 : vector<64x32xf32>, vector<64x32xf32> -> vector<64x64xf32>
    %33 = arith.truncf %32 : vector<64x64xf32> to vector<64x64xbf16>
    %cst_21 = arith.constant dense<0.000000e+00> : vector<32x64xf32>
    %34 = tpu.matmul %7, %33, %cst_21 {dimension_numbers = #tpu.dot_dimension_numbers<[1], [0], [0], [1], [0, 0, 1, 1], [], []>} : vector<32x64xbf16>, vector<64x64xbf16>, vector<32x64xf32> -> vector<32x64xf32>
    %35 = vector.extract_strided_slice %34 {offsets = [0, 0], sizes = [32, 32], strides = [1, 1]} : vector<32x64xf32> to vector<32x32xf32>
    %36 = vector.extract_strided_slice %34 {offsets = [0, 32], sizes = [32, 32], strides = [1, 1]} : vector<32x64xf32> to vector<32x32xf32>
    %cst_22 = arith.constant 9.99999997E-7 : f32
    %37 = vector.broadcast %cst_22 : f32 to vector<32x32xf32>
    %38 = arith.addf %36, %37 : vector<32x32xf32>
    %39 = tpu.reciprocal %38 {approx = true} : vector<32x32xf32> -> vector<32x32xf32>
    %40 = arith.mulf %35, %39 : vector<32x32xf32>
    %c0_23 = arith.constant 0 : index
    %c0_24 = arith.constant 0 : index
    %41 = vector.load %arg10[%c0_23, %c0_24] : memref<2x128xf32, #tpu.memory_space<vmem>>, vector<2x128xf32>
    %42 = vector.extract_strided_slice %41 {offsets = [0, 0], sizes = [1, 32], strides = [1, 1]} : vector<2x128xf32> to vector<1x32xf32>
    %43 = vector.extract_strided_slice %41 {offsets = [0, 32], sizes = [1, 32], strides = [1, 1]} : vector<2x128xf32> to vector<1x32xf32>
    %44 = vector.extract_strided_slice %41 {offsets = [0, 64], sizes = [1, 32], strides = [1, 1]} : vector<2x128xf32> to vector<1x32xf32>
    %45 = vector.extract_strided_slice %41 {offsets = [0, 96], sizes = [1, 32], strides = [1, 1]} : vector<2x128xf32> to vector<1x32xf32>
    %46 = vector.extract_strided_slice %41 {offsets = [1, 0], sizes = [1, 32], strides = [1, 1]} : vector<2x128xf32> to vector<1x32xf32>
    %47 = vector.extract_strided_slice %41 {offsets = [1, 32], sizes = [1, 32], strides = [1, 1]} : vector<2x128xf32> to vector<1x32xf32>
    %48 = vector.extract_strided_slice %41 {offsets = [1, 64], sizes = [1, 64], strides = [1, 1]} : vector<2x128xf32> to vector<1x64xf32>
    %49 = vector.extract_strided_slice %1 {offsets = [0, 0], sizes = [32, 32], strides = [1, 1]} : vector<96x32xbf16> to vector<32x32xbf16>
    %50 = arith.extf %49 : vector<32x32xbf16> to vector<32x32xf32>
    %51 = arith.truncf %40 : vector<32x32xf32> to vector<32x32xbf16>
    %c0_25 = arith.constant 0 : index
    %c0_26 = arith.constant 0 : index
    %52 = vector.load %arg7[%c0_25, %c0_26] : memref<32x32xbf16, #tpu.memory_space<vmem>>, vector<32x32xbf16>
    %cst_27 = arith.constant dense<0.000000e+00> : vector<32x32xf32>
    %53 = tpu.matmul %51, %52, %cst_27 {dimension_numbers = #tpu.dot_dimension_numbers<[1], [0], [0], [1], [0, 0, 1, 1], [], []>} : vector<32x32xbf16>, vector<32x32xbf16>, vector<32x32xf32> -> vector<32x32xf32>
    %54 = vector.broadcast %42 : vector<1x32xf32> to vector<32x32xf32>
    %55 = arith.addf %53, %54 : vector<32x32xf32>
    %56 = arith.addf %50, %55 : vector<32x32xf32>
    %57 = vector.broadcast %43 : vector<1x32xf32> to vector<32x32xf32>
    %58 = arith.mulf %56, %57 : vector<32x32xf32>
    %59 = vector.broadcast %44 : vector<1x32xf32> to vector<32x32xf32>
    %60 = arith.addf %58, %59 : vector<32x32xf32>
    %61 = arith.truncf %60 : vector<32x32xf32> to vector<32x32xbf16>
    %c0_28 = arith.constant 0 : index
    %c0_29 = arith.constant 0 : index
    %62 = vector.load %arg8[%c0_28, %c0_29] : memref<32x64xbf16, #tpu.memory_space<vmem>>, vector<32x64xbf16>
    %cst_30 = arith.constant dense<0.000000e+00> : vector<32x64xf32>
    %63 = tpu.matmul %61, %62, %cst_30 {dimension_numbers = #tpu.dot_dimension_numbers<[1], [0], [0], [1], [0, 0, 1, 1], [], []>} : vector<32x32xbf16>, vector<32x64xbf16>, vector<32x64xf32> -> vector<32x64xf32>
    %64 = vector.broadcast %48 : vector<1x64xf32> to vector<32x64xf32>
    %65 = arith.addf %63, %64 : vector<32x64xf32>
    %cst_31 = arith.constant 0.000000e+00 : f32
    %66 = vector.broadcast %cst_31 : f32 to vector<32x64xf32>
    %67 = arith.maximumf %65, %66 : vector<32x64xf32>
    %68 = arith.truncf %67 : vector<32x64xf32> to vector<32x64xbf16>
    %c0_32 = arith.constant 0 : index
    %c0_33 = arith.constant 0 : index
    %69 = vector.load %arg9[%c0_32, %c0_33] : memref<64x32xbf16, #tpu.memory_space<vmem>>, vector<64x32xbf16>
    %cst_34 = arith.constant dense<0.000000e+00> : vector<32x32xf32>
    %70 = tpu.matmul %68, %69, %cst_34 {dimension_numbers = #tpu.dot_dimension_numbers<[1], [0], [0], [1], [0, 0, 1, 1], [], []>} : vector<32x64xbf16>, vector<64x32xbf16>, vector<32x32xf32> -> vector<32x32xf32>
    %71 = vector.broadcast %45 : vector<1x32xf32> to vector<32x32xf32>
    %72 = arith.addf %70, %71 : vector<32x32xf32>
    %73 = arith.addf %60, %72 : vector<32x32xf32>
    %74 = vector.broadcast %46 : vector<1x32xf32> to vector<32x32xf32>
    %75 = arith.mulf %73, %74 : vector<32x32xf32>
    %76 = vector.broadcast %47 : vector<1x32xf32> to vector<32x32xf32>
    %77 = arith.addf %75, %76 : vector<32x32xf32>
    %c0_35 = arith.constant 0 : index
    %c0_36 = arith.constant 0 : index
    %c0_37 = arith.constant 0 : index
    %78 = vector.load %arg11[%c0_35, %c0_36, %c0_37] : memref<1x32x32xf32, #tpu.memory_space<vmem>>, vector<1x32x32xf32>
    %79 = vector.shape_cast %78 : vector<1x32x32xf32> to vector<32x32xf32>
    %80 = vector.shape_cast %77 : vector<32x32xf32> to vector<1x32x32xf32>
    tpu.vector_store %arg11[%c0_35, %c0_36, %c0_37], %80 {strides = array<i32>} : memref<1x32x32xf32, #tpu.memory_space<vmem>>, vector<1x32x32xf32>,
    return
  }
  func.func @transform_0(%arg0: i32) -> (i32, i32, i32) {
    %c0_i32 = arith.constant 0 : i32
    %c0_i32_0 = arith.constant 0 : i32
    %c0_i32_1 = arith.constant 0 : i32
    return %arg0, %c0_i32, %c0_i32_0 : i32, i32, i32
  }
  func.func @transform_1(%arg0: i32) -> (i32, i32, i32) {
    %c0_i32 = arith.constant 0 : i32
    %c0_i32_0 = arith.constant 0 : i32
    %c0_i32_1 = arith.constant 0 : i32
    return %arg0, %c0_i32, %c0_i32_0 : i32, i32, i32
  }
  func.func @transform_2(%arg0: i32) -> (i32, i32, i32) {
    %c0_i32 = arith.constant 0 : i32
    %c0_i32_0 = arith.constant 0 : i32
    %c0_i32_1 = arith.constant 0 : i32
    return %arg0, %c0_i32, %c0_i32_0 : i32, i32, i32
  }
  func.func @transform_3(%arg0: i32) -> (i32, i32, i32) {
    %c0_i32 = arith.constant 0 : i32
    %c0_i32_0 = arith.constant 0 : i32
    %c0_i32_1 = arith.constant 0 : i32
    return %arg0, %c0_i32, %c0_i32_0 : i32, i32, i32
  }
  func.func @transform_4(%arg0: i32) -> (i32, i32) {
    %c0_i32 = arith.constant 0 : i32
    %c0_i32_0 = arith.constant 0 : i32
    %c0_i32_1 = arith.constant 0 : i32
    return %c0_i32, %c0_i32_0 : i32, i32
  }
  func.func @transform_5(%arg0: i32) -> (i32, i32) {
    %c0_i32 = arith.constant 0 : i32
    %c0_i32_0 = arith.constant 0 : i32
    %c0_i32_1 = arith.constant 0 : i32
    return %c0_i32, %c0_i32_0 : i32, i32
  }
  func.func @transform_6(%arg0: i32) -> (i32, i32) {
    %c0_i32 = arith.constant 0 : i32
    %c0_i32_0 = arith.constant 0 : i32
    %c0_i32_1 = arith.constant 0 : i32
    return %c0_i32, %c0_i32_0 : i32, i32
  }
  func.func @transform_7(%arg0: i32) -> (i32, i32) {
    %c0_i32 = arith.constant 0 : i32
    %c0_i32_0 = arith.constant 0 : i32
    %c0_i32_1 = arith.constant 0 : i32
    return %c0_i32, %c0_i32_0 : i32, i32
  }
  func.func @transform_8(%arg0: i32) -> (i32, i32) {
    %c0_i32 = arith.constant 0 : i32
    %c0_i32_0 = arith.constant 0 : i32
    %c0_i32_1 = arith.constant 0 : i32
    return %c0_i32, %c0_i32_0 : i32, i32
  }
  func.func @transform_9(%arg0: i32) -> (i32, i32) {
    %c0_i32 = arith.constant 0 : i32
    %c0_i32_0 = arith.constant 0 : i32
    %c0_i32_1 = arith.constant 0 : i32
    return %c0_i32, %c0_i32_0 : i32, i32
  }
  func.func @transform_10(%arg0: i32) -> (i32, i32, i32) {
    %c0_i32 = arith.constant 0 : i32
    %c0_i32_0 = arith.constant 0 : i32
    %c0_i32_1 = arith.constant 0 : i32
    return %arg0, %c0_i32, %c0_i32_0 : i32, i32, i32
  }
}

</mosaic_0001>

<bundles_post_ra>
// kernel: eq.18
= control target key start
LH: loop header
LB: loop body
LE: loop exit
PB: predicated region body
PF: predicated region fallthrough
CT: control target
= control target key end

     0   :  { %s7_s6 = smov 3  ;;  %s39_s9 = smov 48   ;;  %vm4_vm0 = vcmask 130048   ;;  %vm11_vm1 = vcmask 523648   ;;  %vm18_vm2 = vcmask 392448   ;;  %vm25_vm3 = vcmask 261248   ;;  %s67_s0 = inlined_call_operand.vmem [shape: s32[8,16], index: 0, kind: input, shape index: {}]   ;;  %s68_s1 = inlined_call_operand.vmem [shape: s32[2,64], index: 1, kind: output, shape index: {}]  }
   0x1   :  { %v33_v0 = vld [vmem:[%s67_s0 + $0x3] ss:$4 sm:%s7_s6]   ;;  %s21_s10 = smov 3  ;;  %s14_s13 = smov 3 }
   0x2   :  { %9 = vrot.lane.b32.xlu0 %v33_v0, %s39_s9  ;;  %v35_v1 = vld [vmem:[%s67_s0 + $0x1] ss:$4 sm:%s21_s10]   ;;  %s40_s14 = smov 16   ;;  %s41_s17 = smov 32  }
   0x3   :  { %23 = vrot.lane.b32.xlu1 %v35_v1, %s40_s14  ;;  %v34_v2 = vld [vmem:[%s67_s0 + $0x2] ss:$4 sm:%s14_s13]   ;;  %s2_s18 = smov 3 }
   0x4   :  { %v3_v3 = vld [vmem:[%s67_s0] ss:$4 sm:%s2_s18]  }
   0x5   :  { %5 = vst.msk [vmem:[#allocation0] sm:$0x3] %vm4_vm0, %v3_v3  }
   0xa   :  { %16 = vrot.lane.b32.xlu0 %v34_v2, %s41_s17 }
  0x74   :  { %v10_v4 = vpop.permute.xlu0 %9  }
  0x75   :  { %12 = vst.msk [vmem:[#allocation0] sm:$0x3] %vm11_vm1, %v10_v4   ;;  %v24_v5 = vpop.permute.xlu1 %23  }
  0x7c   :  { %v17_v6 = vpop.permute.xlu0 %16  }
  0x7d   :  { %19 = vst.msk [vmem:[#allocation0] sm:$0x3] %vm18_vm2, %v17_v6  }
  0x7e   :  { %26 = vst.msk [vmem:[#allocation0] sm:$0x3] %vm25_vm3, %v24_v5  }
  0x85   :  { %v29_v7 = vld [vmem:[#allocation0] sm:$0x3] }
  0x86   :  { %32 = vst [vmem:[%s68_s1] sm:$0x3] %v29_v7 }

// kernel: graph_transformer_layer.1
= control target key start
LH: loop header
LB: loop body
LE: loop exit
PB: predicated region body
PF: predicated region fallthrough
CT: control target
= control target key end

     0   :  { %15 = vsyncpa [#allocation3], 0  ;;  %s1944_s0 = inlined_call_operand.vmem [shape: bf16[2,96,32], index: 0, kind: input, shape index: {}]   ;;  %s1945_s1 = inlined_call_operand.vmem [shape: bf16[2,64,32], index: 1, kind: input, shape index: {}]   ;;  %s1946_s2 = inlined_call_operand.vmem [shape: bf16[2,64,32], index: 2, kind: input, shape index: {}]   ;;  %s1947_s3 = inlined_call_operand.vmem [shape: bf16[2,32,64], index: 3, kind: input, shape index: {}]   ;;  %s1948_s4 = inlined_call_operand.vmem [shape: bf16[32,128], index: 4, kind: input, shape index: {}]   ;;  %s1949_s5 = inlined_call_operand.vmem [shape: bf16[32,32], index: 5, kind: input, shape index: {}]   ;;  %s1950_s6 = inlined_call_operand.vmem [shape: bf16[32,32], index: 6, kind: input, shape index: {}]   ;;  %s1951_s7 = inlined_call_operand.vmem [shape: bf16[32,64], index: 7, kind: input, shape index: {}]   ;;  %s1952_s8 = inlined_call_operand.vmem [shape: bf16[64,32], index: 8, kind: input, shape index: {}]   ;;  %s1953_s9 = inlined_call_operand.vmem [shape: f32[2,128], index: 9, kind: input, shape index: {}]   ;;  %s1954_s10 = inlined_call_operand.hbm [shape: f32[2,32,32], index: 10, kind: output, shape index: {}]  }
   0x1   :  { %17 = vsyncpa [#allocation3 + $0x1], 0  ;;  %s1709_s13 = smov 0   ;;  %s1711_s14 = smov 0  }
   0x2   :  { %s1713_s15 = smov 0   ;;  %s1715_s16 = smov 0  }
   0x3 LB: > { %s1730_s17 = sadd.s32 4294967295, %s1647_s16   ;;  %s1299_s18 = sadd.s32 4294967294, %s1647_s16   ;;  %s1647_s16 = sphi %s1715_s16, %s1960_s16   ;;  %s1643_s15 = sphi %s1713_s15, %s1959_s15   ;;  %s1639_s14 = sphi %s1711_s14, %s1958_s14   ;;  %s1635_s13 = sphi %s1709_s13, %s1957_s13  }
   0x4   : > { %s1734_s19 = sadd.s32 1, %s1647_s16   ;;  %s260_s20 = sadd.s32 1, %s1643_s15 }
   0x5   : > { %s257_s21 = ssub.s32 %s1647_s16, %s1734_s19  ;;  %p270_p0 = scmp.ne.s32.totalorder %s1643_s15, %s1639_s14 }
   0x6   : > { %p258_p1 = scmp.eq.s32.totalorder %s257_s21, 0  ;;  %p271_p2 = scmp.eq.s32.totalorder %s1730_s17, 1 }
   0x7   : > { %p276_p3 = scmp.ne.s32.totalorder %s1639_s14, %s1635_s13  ;;  %p277_p4 = scmp.eq.s32.totalorder %s1299_s18, 1 }
   0x8   : > { %s1745_s22 = scalar_select %p258_p1, %s1643_s15, %s260_s20  }
   0x9   : > { %p1747_p5 = por %p271_p2, %p270_p0  ;;  %p1751_p6 = por %p277_p4, %p276_p3 }
   0xa   : > { %p1302_p7 = scmp.ge.s32.totalorder %s1647_s16, 1  ;;  %p345_p8 = scmp.lt.s32.totalorder %s1647_s16, 3 }
   0xc   : > { %p346_p9 = pnand %p1302_p7, %p345_p8 }
   0xd   : > { %p398_p10 = scmp.lt.s32.totalorder (!%p346_p9), %s1730_s17, 1  ;;  %s1649_s21 = smov (!%p346_p9), 96  }
   0xe   : > { %349 = sbr.rel (%p346_p9) target bundleno = 1508 (0x5e4), region = 60  ;;  %s1650_s28 = smov (!%p346_p9), 32  }
  0x13   : > { %v1482_v0 = vld [vmem:[%s1948_s4 + $0x8] sm:$0xff]  ;;  %v1481_v1 = vld [vmem:[%s1948_s4] sm:$0xff]  ;;  %s1765_s29 = scalar_select %p398_p10, %s1730_s17, 1  ;;  %vm497_vm0 = vcmask 261120   ;;  %vm930_vm1 = vcmask 523264  }
  0x14   : > { %522 = vmatpush.bf16.msra.mxu0 %v1482_v0  ;;  %1494 = vmatpush.bf16.msra.mxu1 %v1482_v0  ;;  %v1484_v32 = vld [vmem:[%s1949_s5 + $0x8] sm:$0xff]  ;;  %v1483_v33 = vld [vmem:[%s1949_s5] sm:$0xff] }
  0x15   : > { %s1496_s30 = smul.u32 48, %s1765_s29  ;;  %s1462_s20 = sshll.u32 %s1765_s29, 5  ;;  %781 = vmatpush.bf16.msra.mxu3 %v1484_v32 }
  0x16   : > { %s412_s27 = scalar_lea.vmem %s1946_s2, %s1462_s20  ;;  %s407_s12 = scalar_lea.vmem %s1945_s1, %s1462_s20 }
  0x17   : > { %s1771_s18 = scalar_lea.vmem %s1944_s0, %s1496_s30  ;;  %v1475_v14 = vld [vmem:[%s412_s27] sm:$0xff]  ;;  %v1476_v15 = vld [vmem:[%s412_s27 + $0x8] sm:$0xff]  ;;  %v1477_v18 = vld [vmem:[%s412_s27 + $0x10] sm:$0xff]  ;;  %s1464_s30 = sshll.u32 %s1765_s29, 4 }
  0x18   : > { %523 = vmatpush.bf16.msra.mxu0 %v1481_v1  ;;  %1495 = vmatpush.bf16.msra.mxu1 %v1481_v1  ;;  %v1465_v2 = vld [vmem:[%s1771_s18] sm:$0xff]  ;;  %v1466_v3 = vld [vmem:[%s1771_s18 + $0x8] sm:$0xff]  ;;  %v1467_v4 = vld [vmem:[%s1771_s18 + $0x10] sm:$0xff]  ;;  %s417_s20 = scalar_lea.vmem %s1947_s3, %s1464_s30  ;;  %s395_s29 = sand.u32 1, %s1639_s14  }
  0x19   : > { %v1470_v6 = vld [vmem:[%s1771_s18 + $0x28] sm:$0xff]  ;;  %v1468_v8 = vld [vmem:[%s1771_s18 + $0x18] sm:$0xff]  ;;  %v1469_v13 = vld [vmem:[%s1771_s18 + $0x20] sm:$0xff]  ;;  %782 = vmatpush.bf16.msra.mxu3 %v1483_v33  ;;  %s1303_s25 = sshll.u32 %s395_s29, 5 }
  0x1a   : > { %v1471_v22 = vld [vmem:[%s407_s12] sm:$0xff]  ;;  %v1478_v24 = vld [vmem:[%s412_s27 + $0x18] sm:$0xff]  ;;  %v1472_v26 = vld [vmem:[%s407_s12 + $0x8] sm:$0xff]  ;;  %s397_s26 = scalar_lea.vmem [#allocation2], %s1303_s25  ;;  %s1605_s27 = scalar_lea.hbm %s1954_s10, 64 }
  0x1b   : > { %1343 = vmatmul.msk.bf16.vlgmr.msra.gmra.mxu0 %vm497_vm0, %v1465_v2  ;;  %1348 = vmatmul.msk.bf16.vlgmr.msra.gmra.mxu1 %vm497_vm0, %v1470_v6  ;;  %v1473_v30 = vld [vmem:[%s407_s12 + $0x10] sm:$0xff]  ;;  %v1474_v31 = vld [vmem:[%s407_s12 + $0x18] sm:$0xff]  ;;  %s1651_s12 = smov 64  }
  0x2b   : > { %1344 = vmatmul.msk.bf16.gmra.mxu0 %vm497_vm0, %v1466_v3 }
  0x3b   : > { %1345 = vmatmul.msk.bf16.gmra.mxu0 %vm497_vm0, %v1467_v4 }
  0x4b   : > { %1346 = vmatmul.msk.bf16.gmra.mxu0 %vm497_vm0, %v1468_v8 }
  0x5b   : > { %1347 = vmatmul.msk.bf16.gmra.mxu0 %vm497_vm0, %v1469_v13 }
  0x98   : > { %v525_v5 = vpop.f32.mrf.mxu0  ;;  %v550_v28 = vpop.f32.mrf.mxu1 }
  0xa0   : > { %v527_v7 = vpop.f32.mrf.mxu0  ;;  %v552_v29 = vpop.f32.mrf.mxu1 }
  0xa1   : > { %v555_v12 = vpack.c.bf16 %v527_v7, %v525_v5 }
  0xa8   : > { %v530_v9 = vpop.f32.mrf.mxu0 }
  0xb0   : > { %v532_v10 = vpop.f32.mrf.mxu0 }
  0xb1   : > { %v556_v11 = vpack.c.bf16 %v532_v10, %v530_v9 }
  0xb3   : > { %581 = vrot.lane.b32.xlu0 %v556_v11, %s1649_s21  ;;  %664 = vmatpush.bf16.msra.mxu2 %v556_v11 }
  0xb7   : > { %665 = vmatpush.bf16.msra.mxu2 %v555_v12 }
  0xb8   : > { %v535_v16 = vpop.f32.mrf.mxu0 }
  0xb9   : > { %711 = vrot.lane.b32.xlu1 %v535_v16, %s1650_s28 }
  0xba   : > { %1385 = vmatmul.msk.bf16.vlgmr.msra.gmra.mxu2 %vm497_vm0, %v1475_v14 }
  0xbb   : > { %579 = vrot.lane.b32.xlu0 %v555_v12, %s1649_s21 }
  0xc0   : > { %v537_v17 = vpop.f32.mrf.mxu0 }
  0xc1   : > { %713 = vrot.lane.b32.xlu1 %v537_v17, %s1650_s28 }
  0xc8   : > { %v540_v20 = vpop.f32.mrf.mxu0 }
  0xc9   : > { %715 = vrot.lane.b32.xlu2 %v540_v20, %s1650_s28 }
  0xca   : > { %1386 = vmatmul.msk.bf16.gmra.mxu2 %vm497_vm0, %v1476_v15 }
  0xd0   : > { %v542_v23 = vpop.f32.mrf.mxu0 }
  0xd1   : > { %717 = vrot.lane.b32.xlu2 %v542_v23, %s1650_s28 }
  0xd8   : > { %v545_v25 = vpop.f32.mrf.mxu0 }
  0xd9   : > { %719 = vrot.lane.b32.xlu0 %v545_v25, %s1650_s28  ;;  %723 = vrot.lane.b32.xlu2 %v550_v28, %s1650_s28 }
  0xda   : > { %1387 = vmatmul.msk.bf16.gmra.mxu2 %vm497_vm0, %v1477_v18 }
  0xe0   : > { %v547_v27 = vpop.f32.mrf.mxu0 }
  0xe1   : > { %721 = vrot.lane.b32.xlu1 %v547_v27, %s1650_s28  ;;  %725 = vrot.lane.b32.xlu0 %v552_v29, %s1650_s28 }
  0xea   : > { %1388 = vmatmul.msk.bf16.gmra.mxu2 %vm497_vm0, %v1478_v24 }
 0x123   : > { %v716_v50 = vpop.permute.xlu2 %715 }
 0x125   : > { %v582_v19 = vpop.permute.xlu0 %581 }
 0x126   : > { %603 = vmatpush.bf16.msrb.mxu1 %v582_v19 }
 0x12b   : > { %v712_v37 = vpop.permute.xlu1 %711  ;;  %v718_v57 = vpop.permute.xlu2 %717 }
 0x12d   : > { %v580_v21 = vpop.permute.xlu0 %579 }
 0x12e   : > { %604 = vmatpush.bf16.msrb.mxu1 %v580_v21 }
 0x131   : > { %1365 = vmatmul.msk.bf16.vlgmr.msrb.gmra.mxu1 %vm497_vm0, %v1471_v22 }
 0x133   : > { %v714_v44 = vpop.permute.xlu1 %713  ;;  %v724_v17 = vpop.permute.xlu2 %723 }
 0x13d   : > { %v667_v34 = vpop.f32.mrf.mxu2 }
 0x141   : > { %1366 = vmatmul.msk.bf16.gmra.mxu1 %vm497_vm0, %v1472_v26 }
 0x145   : > { %v669_v35 = vpop.f32.mrf.mxu2 }
 0x14b   : > { %v720_v3 = vpop.permute.xlu0 %719 }
 0x14d   : > { %v672_v39 = vpop.f32.mrf.mxu2 }
 0x151   : > { %1367 = vmatmul.msk.bf16.gmra.mxu1 %vm497_vm0, %v1473_v30 }
 0x153   : > { %v722_v5 = vpop.permute.xlu1 %721  ;;  %v726_v18 = vpop.permute.xlu0 %725 }
 0x155   : > { %v674_v49 = vpop.f32.mrf.mxu2 }
 0x15d   : > { %v677_v55 = vpop.f32.mrf.mxu2 }
 0x161   : > { %1368 = vmatmul.msk.bf16.gmra.mxu1 %vm497_vm0, %v1474_v31 }
 0x165   : > { %v679_v62 = vpop.f32.mrf.mxu2 }
 0x16d   : > { %v682_v8 = vpop.f32.mrf.mxu2 }
 0x175   : > { %v684_v12 = vpop.f32.mrf.mxu2 }
 0x1ae   : > { %v606_v36 = vpop.f32.mrf.mxu1 }
 0x1af   : > { %v687_v38 = vmul.f32 %v667_v34, %v606_v36 }
 0x1b1   : > { %v695_v41 = vmul.f32 0.35355338, %v687_v38 }
 0x1b3   : > { %v735_v45 = vmul.f32 %v712_v37, %v695_v41 }
 0x1b6   : > { %v608_v40 = vpop.f32.mrf.mxu1 }
 0x1b7   : > { %v688_v42 = vmul.f32 %v669_v35, %v608_v40 }
 0x1b9   : > { %v696_v43 = vmul.f32 0.35355338, %v688_v42 }
 0x1bb   : > { %v736_v46 = vmul.f32 %v714_v44, %v696_v43 }
 0x1bd   : > { %v743_v47 = vpack.c.bf16 %v736_v46, %v735_v45 }
 0x1be   : > { %v611_v48 = vpop.f32.mrf.mxu1 }
 0x1bf   : > { %1397 = vmatmul.msk.bf16.vlgmr.msra.gmra.mxu3 %vm497_vm0, %v743_v47  ;;  %v689_v51 = vmul.f32 %v672_v39, %v611_v48 }
 0x1c1   : > { %v697_v53 = vmul.f32 0.35355338, %v689_v51 }
 0x1c3   : > { %v737_v58 = vmul.f32 %v716_v50, %v697_v53 }
 0x1c6   : > { %v613_v52 = vpop.f32.mrf.mxu1 }
 0x1c7   : > { %v690_v54 = vmul.f32 %v674_v49, %v613_v52 }
 0x1c9   : > { %v698_v56 = vmul.f32 0.35355338, %v690_v54 }
 0x1cb   : > { %v738_v59 = vmul.f32 %v718_v57, %v698_v56 }
 0x1cd   : > { %v744_v60 = vpack.c.bf16 %v738_v59, %v737_v58 }
 0x1ce   : > { %v616_v61 = vpop.f32.mrf.mxu1 }
 0x1cf   : > { %1398 = vmatmul.msk.bf16.gmra.mxu3 %vm497_vm0, %v744_v60  ;;  %852 = vrot.lane.b32.xlu1 %v616_v61, %s1649_s21  ;;  %v691_v63 = vmul.f32 %v677_v55, %v616_v61 }
 0x1d1   : > { %v699_v1 = vmul.f32 0.35355338, %v691_v63 }
 0x1d3   : > { %v739_v6 = vmul.f32 %v720_v3, %v699_v1 }
 0x1d6   : > { %v618_v0 = vpop.f32.mrf.mxu1 }
 0x1d7   : > { %v692_v2 = vmul.f32 %v679_v62, %v618_v0  ;;  %854 = vrot.lane.b32.xlu2 %v618_v0, %s1649_s21 }
 0x1d9   : > { %v700_v4 = vmul.f32 0.35355338, %v692_v2 }
 0x1db   : > { %v740_v7 = vmul.f32 %v722_v5, %v700_v4 }
 0x1dd   : > { %v745_v9 = vpack.c.bf16 %v740_v7, %v739_v6 }
 0x1de   : > { %v621_v10 = vpop.f32.mrf.mxu1 }
 0x1df   : > { %856 = vrot.lane.b32.xlu1 %v621_v10, %s1649_s21  ;;  %1399 = vmatmul.msk.bf16.gmra.mxu3 %vm497_vm0, %v745_v9  ;;  %v693_v11 = vmul.f32 %v682_v8, %v621_v10 }
 0x1e1   : > { %v701_v14 = vmul.f32 0.35355338, %v693_v11 }
 0x1e3   : > { %v741_v19 = vmul.f32 %v724_v17, %v701_v14 }
 0x1e6   : > { %v623_v13 = vpop.f32.mrf.mxu1 }
 0x1e7   : > { %v694_v15 = vmul.f32 %v684_v12, %v623_v13  ;;  %858 = vrot.lane.b32.xlu2 %v623_v13, %s1649_s21  ;;  %848 = vrot.lane.b32.xlu1 %v611_v48, %s1649_s21 }
 0x1e9   : > { %v702_v16 = vmul.f32 0.35355338, %v694_v15 }
 0x1eb   : > { %v742_v20 = vmul.f32 %v726_v18, %v702_v16 }
 0x1ed   : > { %v746_v21 = vpack.c.bf16 %v742_v20, %v741_v19 }
 0x1ef   : > { %850 = vrot.lane.b32.xlu2 %v613_v52, %s1649_s21  ;;  %844 = vrot.lane.b32.xlu1 %v606_v36, %s1649_s21 }
 0x1f0   : > { %1400 = vmatmul.msk.bf16.gmra.mxu3 %vm497_vm0, %v746_v21 }
 0x1f7   : > { %846 = vrot.lane.b32.xlu2 %v608_v40, %s1649_s21 }
 0x231   : > { %v855_v58 = vpop.permute.xlu2 %854 }
 0x241   : > { %v853_v59 = vpop.permute.xlu1 %852  ;;  %v859_v5 = vpop.permute.xlu2 %858 }
 0x242   : > { %v784_v22 = vpop.f32.mrf.mxu3 }
 0x243   : > { %v1401_v23 = vclamps-f32 %v784_v22, 5.0 }
 0x245   : > { %v820_v24 = vmul.f32 1.442695, %v1401_v23 }
 0x247   : > { %1561 = vpow2.f32 %v820_v24 }
 0x249   : > { %v851_v15 = vpop.permute.xlu2 %850 }
 0x24a   : > { %v786_v25 = vpop.f32.mrf.mxu3 }
 0x24b   : > { %v1402_v26 = vclamps-f32 %v786_v25, 5.0 }
 0x24d   : > { %v822_v27 = vmul.f32 1.442695, %v1402_v26  ;;  %v1828_v29 = vpop.eup %1561 }
 0x24f   : > { %1563 = vpow2.f32 %v822_v27 }
 0x251   : > { %v857_v4 = vpop.permute.xlu1 %856  ;;  %v847_v25 = vpop.permute.xlu2 %846 }
 0x252   : > { %v789_v28 = vpop.f32.mrf.mxu3 }
 0x253   : > { %v1403_v49 = vclamps-f32 %v789_v28, 5.0 }
 0x255   : > { %v1830_v30 = vpop.eup %1563  ;;  %v824_v51 = vmul.f32 1.442695, %v1403_v49  ;;  %v1485_v49 = vld [vmem:[%s1950_s6] sm:$0xff] }
 0x256   : > { %v1556_v31 = vpack.i.bf16 %v1830_v30, %v1828_v29  ;;  %v869_v27 = vmul.f32 %v1830_v30, %v847_v25 }
 0x259   : > { %v849_v13 = vpop.permute.xlu1 %848 }
 0x25a   : > { %v791_v32 = vpop.f32.mrf.mxu3 }
 0x25b   : > { %v1404_v47 = vclamps-f32 %v791_v32, 5.0 }
 0x25d   : > { %v826_v50 = vmul.f32 1.442695, %v1404_v47 }
 0x261   : > { %v845_v24 = vpop.permute.xlu1 %844 }
 0x262   : > { %v794_v33 = vpop.f32.mrf.mxu3  ;;  %v868_v28 = vmul.f32 %v1828_v29, %v845_v24 }
 0x263   : > { %v1405_v34 = vclamps-f32 %v794_v33, 5.0 }
 0x265   : > { %v828_v35 = vmul.f32 1.442695, %v1405_v34 }
 0x267   : > { %1565 = vpow2.f32 %v828_v35 }
 0x26a   : > { %v796_v36 = vpop.f32.mrf.mxu3 }
 0x26b   : > { %v1406_v37 = vclamps-f32 %v796_v36, 5.0  ;;  %v1479_v36 = vld [vmem:[%s417_s20] sm:$0xff] }
 0x26d   : > { %v830_v38 = vmul.f32 1.442695, %v1406_v37  ;;  %v1566_v40 = vpop.eup %1565  ;;  %v1480_v37 = vld [vmem:[%s417_s20 + $0x8] sm:$0xff] }
 0x26e   : > { %v872_v61 = vmul.f32 %v1566_v40, %v853_v59 }
 0x26f   : > { %1567 = vpow2.f32 %v830_v38 }
 0x273   : > { %v799_v39 = vpop.f32.mrf.mxu3 }
 0x274   : > { %v1407_v43 = vclamps-f32 %v799_v39, 5.0 }
 0x275   : > { %v1568_v41 = vpop.eup %1567 }
 0x276   : > { %v1541_v42 = vpack.i.bf16 %v1568_v41, %v1566_v40  ;;  %v832_v44 = vmul.f32 1.442695, %v1407_v43  ;;  %v873_v62 = vmul.f32 %v1568_v41, %v855_v58 }
 0x278   : > { %1542 = vrot.lane.b32.xlu0 %v1541_v42, %s1650_s28  ;;  %1569 = vpow2.f32 %v832_v44 }
 0x27b   : > { %v801_v45 = vpop.f32.mrf.mxu3 }
 0x27c   : > { %v1408_v46 = vclamps-f32 %v801_v45, 5.0 }
 0x27e   : > { %v834_v48 = vmul.f32 1.442695, %v1408_v46  ;;  %v1570_v52 = vpop.eup %1569 }
 0x27f   : > { %v874_v7 = vmul.f32 %v1570_v52, %v857_v4 }
 0x280   : > { %1571 = vpow2.f32 %v834_v48  ;;  %v1486_v48 = vld [vmem:[%s1950_s6 + $0x8] sm:$0xff] }
 0x281   : > { %1573 = vpow2.f32 %v826_v50  ;;  %1020 = vmatpush.bf16.msrb.mxu2 %v1486_v48  ;;  %v984_v50 = vld [vmem:[%s1953_s9] sm:$0x3] }
 0x282   : > { %1575 = vpow2.f32 %v824_v51  ;;  %v995_v51 = vperm.slane %v984_v50, 0 }
 0x285   : > { %1021 = vmatpush.bf16.msrb.mxu2 %v1485_v49 }
 0x286   : > { %v1572_v53 = vpop.eup %1571 }
 0x287   : > { %v1546_v54 = vpack.i.bf16 %v1572_v53, %v1570_v52  ;;  %v1574_v55 = vpop.eup %1573  ;;  %v875_v8 = vmul.f32 %v1572_v53, %v859_v5 }
 0x288   : > { %v1576_v56 = vpop.eup %1575  ;;  %v871_v18 = vmul.f32 %v1574_v55, %v851_v15 }
 0x289   : > { %1547 = vrot.lane.b32.xlu0 %v1546_v54, %s1650_s28  ;;  %v1551_v57 = vpack.i.bf16 %v1574_v55, %v1576_v56  ;;  %v870_v17 = vmul.f32 %v1576_v56, %v849_v13 }
 0x291   : > { %1552 = vrot.lane.b32.xlu0 %v1551_v57, %s1650_s28 }
 0x299   : > { %1557 = vrot.lane.b32.xlu0 %v1556_v31, %s1650_s28 }
 0x2ea   : > { %v1543_v60 = vpop.permute.xlu0 %1542 }
 0x2eb   : > { %v1545_v63 = vunpack.i.h.bf16 %v1543_v60  ;;  %v1544_v0 = vunpack.i.l.bf16 %v1543_v60 }
 0x2ed   : > { %v912_v1 = vsel %vm497_vm0, %v872_v61, %v1544_v0  ;;  %v913_v2 = vsel %vm497_vm0, %v873_v62, %v1545_v63  ;;  %v1488_v62 = vld [vmem:[%s1951_s7 + $0x8] sm:$0xff]  ;;  %v1487_v63 = vld [vmem:[%s1951_s7] sm:$0xff] }
 0x2ee   : > { %v918_v3 = vpack.c.bf16 %v913_v2, %v912_v1  ;;  %1087 = vmatpush.bf16.msrb.mxu3 %v1488_v62  ;;  %v419_v0 = vld [vmem:[%s1771_s18] sm:$0xff]   ;;  %v1878_v2 = vperm.slane %v984_v50, 1 }
 0x2f2   : > { %1088 = vmatpush.bf16.msrb.mxu3 %v1487_v63 }
 0x2fb   : > { %v1548_v6 = vpop.permute.xlu0 %1547 }
 0x2fc   : > { %v1550_v9 = vunpack.i.h.bf16 %v1548_v6  ;;  %v1549_v10 = vunpack.i.l.bf16 %v1548_v6  ;;  %v986_v6 = vunpack.c.h.bf16 %v419_v0 }
 0x2fe   : > { %v914_v11 = vsel %vm497_vm0, %v874_v7, %v1549_v10  ;;  %v915_v12 = vsel %vm497_vm0, %v875_v8, %v1550_v9 }
 0x2ff   : > { %v919_v14 = vpack.c.bf16 %v915_v12, %v914_v11  ;;  %v1492_v12 = vld [vmem:[%s1952_s8 + $0x18] sm:$0xff] }
 0x300   : > { %1151 = vmatpush.bf16.msrb.mxu0 %v1492_v12 }
 0x301   : > { %941 = vmatpush.bf16.msra.mxu1 %v919_v14 }
 0x303   : > { %v1553_v16 = vpop.permute.xlu0 %1552 }
 0x304   : > { %v1555_v19 = vunpack.i.h.bf16 %v1553_v16  ;;  %v1554_v20 = vunpack.i.l.bf16 %v1553_v16 }
 0x305   : > { %942 = vmatpush.bf16.msra.mxu1 %v918_v3  ;;  %v985_v3 = vunpack.c.l.bf16 %v419_v0 }
 0x306   : > { %v910_v21 = vsel %vm497_vm0, %v870_v17, %v1554_v20  ;;  %v911_v22 = vsel %vm497_vm0, %v871_v18, %v1555_v19  ;;  %v421_v18 = vld [vmem:[%s1771_s18 + $0x8] sm:$0xff]   ;;  %s1198_s18 = sshll.u32 %s397_s26, 4  ;;  %s1199_s18 = int_to_ptr.vmem [resolvable:$true] %s1198_s18 }
 0x307   : > { %v917_v23 = vpack.c.bf16 %v911_v22, %v910_v21  ;;  %v987_v20 = vunpack.c.l.bf16 %v421_v18 }
 0x309   : > { %943 = vmatpush.bf16.msra.mxu1 %v917_v23  ;;  %v988_v23 = vunpack.c.h.bf16 %v421_v18 }
 0x30b   : > { %v1558_v26 = vpop.permute.xlu0 %1557 }
 0x30c   : > { %v1560_v31 = vunpack.i.h.bf16 %v1558_v26  ;;  %v1559_v32 = vunpack.i.l.bf16 %v1558_v26 }
 0x30e   : > { %v908_v33 = vsel %vm497_vm0, %v868_v28, %v1559_v32  ;;  %v909_v34 = vsel %vm497_vm0, %v869_v27, %v1560_v31 }
 0x30f   : > { %v916_v35 = vpack.c.bf16 %v909_v34, %v908_v33  ;;  %v1491_v34 = vld [vmem:[%s1952_s8 + $0x10] sm:$0xff] }
 0x310   : > { %1152 = vmatpush.bf16.msrb.mxu0 %v1491_v34 }
 0x311   : > { %944 = vmatpush.bf16.msra.mxu1 %v916_v35  ;;  %v1490_v35 = vld [vmem:[%s1952_s8 + $0x8] sm:$0xff] }
 0x314   : > { %1417 = vmatmul.msk.bf16.vlgmr.msra.gmra.mxu1 %vm930_vm1, %v1479_v36  ;;  %1153 = vmatpush.bf16.msrb.mxu0 %v1490_v35  ;;  %v1489_v36 = vld [vmem:[%s1952_s8] sm:$0xff] }
 0x318   : > { %1154 = vmatpush.bf16.msrb.mxu0 %v1489_v36 }
 0x324   : > { %1418 = vmatmul.msk.bf16.gmra.mxu1 %vm930_vm1, %v1480_v37 }
 0x391   : > { %v946_v29 = vpop.f32.mrf.mxu1 }
 0x392   : > { %v956_v30 = vadd.f32 1e-06, %v946_v29 }
 0x394   : > { %1577 = vrcp.f32 %v956_v30 }
 0x399   : > { %v948_v38 = vpop.f32.mrf.mxu1 }
 0x39a   : > { %v1578_v39 = vpop.eup %1577  ;;  %v957_v40 = vadd.f32 1e-06, %v948_v38 }
 0x39b   : > { %968 = vrot.lane.b32.xlu1 %v1578_v39, %s1649_s21 }
 0x39c   : > { %1579 = vrcp.f32 %v957_v40 }
 0x3a1   : > { %v951_v41 = vpop.f32.mrf.mxu1 }
 0x3a2   : > { %v1580_v42 = vpop.eup %1579  ;;  %v958_v43 = vadd.f32 1e-06, %v951_v41 }
 0x3a3   : > { %970 = vrot.lane.b32.xlu2 %v1580_v42, %s1649_s21 }
 0x3a4   : > { %1581 = vrcp.f32 %v958_v43 }
 0x3a9   : > { %v953_v44 = vpop.f32.mrf.mxu1 }
 0x3aa   : > { %v1582_v45 = vpop.eup %1581  ;;  %v959_v46 = vadd.f32 1e-06, %v953_v44 }
 0x3ab   : > { %972 = vrot.lane.b32.xlu0 %v1582_v45, %s1649_s21  ;;  %1038 = vrot.lane.b32.xlu2 %v995_v51, %s1649_s21 }
 0x3ac   : > { %1583 = vrcp.f32 %v959_v46 }
 0x3b2   : > { %v1584_v47 = vpop.eup %1583 }
 0x3b3   : > { %974 = vrot.lane.b32.xlu1 %v1584_v47, %s1649_s21  ;;  %1045 = vrot.lane.b32.xlu0 %v995_v51, %s1651_s12 }
 0x3b4   : > { %1138 = vrot.lane.b32.xlu2 %v995_v51, %s1650_s28  ;;  %s1493_s28 = sshll.u32 %s1730_s17, 5  ;;  %s1186_s17 = scalar_lea.sflag [#allocation3], %s395_s29 }
 0x3b5   : > { %s1197_s30 = scalar_lea.hbm %s1954_s10, %s1493_s28 }
 0x3b6   : > { %s1200_s11 = sshll.u32 %s1197_s30, 4  ;;  %s1201_s11 = int_to_ptr.hbm [resolvable:$true] %s1200_s11 }
 0x3bb   : > { %1072 = vrot.lane.b32.xlu1 %v1878_v2, %s1651_s12  ;;  %1174 = vrot.lane.b32.xlu0 %v1878_v2, %s1649_s21  ;;  %s1599_s12 = sshra.s32 %s1201_s11, 4  ;;  %s1600_s12 = int_to_ptr.hbm [resolvable:$true] %s1599_s12 }
 0x3bc   : > { %s1601_s20 = scalar_lea.hbm %s1600_s12, 32  ;;  %p1606_p0 = scmp.lt.s32.totalorder %s1600_s12, %s1954_s10 }
 0x3bd   : > { %p1602_p11 = scmp.ne.s32.totalorder %s1600_s12, %s1601_s20  ;;  %p1607_p1 = scmp.lt.s32.totalorder %s1605_s27, %s1601_s20 }
 0x3bf   : > { %p1603_p12 = pnand %p1602_p11, %p1747_p5  ;;  %p1608_p2 = por %p1607_p1, %p1606_p0 }
 0x3c1   : > { %p1604_p13 = pneg %p1603_p12 }
 0x3c3   : > { %p1609_p3 = pnand %p1608_p2, %p1604_p13 }
 0x3fd   : > { %v971_v52 = vpop.permute.xlu2 %970 }
 0x3fe   : > { %v981_v54 = vmul.f32 %v971_v52, %v948_v38 }
 0x405   : > { %v1039_v7 = vpop.permute.xlu2 %1038 }
 0x40d   : > { %v969_v53 = vpop.permute.xlu1 %968 }
 0x40e   : > { %v980_v55 = vmul.f32 %v969_v53, %v946_v29  ;;  %v1139_v50 = vpop.permute.xlu2 %1138 }
 0x410   : > { %v989_v56 = vpack.c.bf16 %v981_v54, %v980_v55 }
 0x412   : > { %1427 = vmatmul.msk.bf16.vlgmr.msrb.gmra.mxu2 %vm497_vm0, %v989_v56 }
 0x41d   : > { %v973_v57 = vpop.permute.xlu0 %972 }
 0x41e   : > { %v982_v59 = vmul.f32 %v973_v57, %v951_v41 }
 0x425   : > { %v975_v58 = vpop.permute.xlu1 %974  ;;  %v1046_v13 = vpop.permute.xlu0 %1045 }
 0x426   : > { %v983_v60 = vmul.f32 %v975_v58, %v953_v44 }
 0x428   : > { %v990_v61 = vpack.c.bf16 %v983_v60, %v982_v59 }
 0x42a   : > { %1428 = vmatmul.msk.bf16.gmra.mxu2 %vm497_vm0, %v990_v61 }
 0x42d   : > { %v1073_v29 = vpop.permute.xlu1 %1072  ;;  %v1175_v54 = vpop.permute.xlu0 %1174 }
 0x495   : > { %v1023_v1 = vpop.f32.mrf.mxu2 }
 0x496   : > { %v1024_v4 = vadd.f32 %v1023_v1, %v995_v51 }
 0x498   : > { %v1033_v5 = vadd.f32 %v1024_v4, %v985_v3 }
 0x49a   : > { %v1041_v10 = vmul.f32 %v1039_v7, %v1033_v5 }
 0x49c   : > { %v1048_v15 = vadd.f32 %v1046_v13, %v1041_v10 }
 0x49d   : > { %v1025_v8 = vpop.f32.mrf.mxu2 }
 0x49e   : > { %v1026_v9 = vadd.f32 %v1025_v8, %v995_v51 }
 0x4a0   : > { %v1034_v11 = vadd.f32 %v1026_v9, %v986_v6 }
 0x4a2   : > { %v1042_v14 = vmul.f32 %v1039_v7, %v1034_v11 }
 0x4a4   : > { %v1049_v16 = vadd.f32 %v1046_v13, %v1042_v14 }
 0x4a6   : > { %v1052_v17 = vpack.c.bf16 %v1049_v16, %v1048_v15 }
 0x4a8   : > { %1437 = vmatmul.msk.bf16.vlgmr.msrb.gmra.mxu3 %vm497_vm0, %v1052_v17 }
 0x4ad   : > { %v1028_v19 = vpop.f32.mrf.mxu2 }
 0x4ae   : > { %v1029_v21 = vadd.f32 %v1028_v19, %v995_v51 }
 0x4b0   : > { %v1035_v22 = vadd.f32 %v1029_v21, %v987_v20 }
 0x4b2   : > { %v1043_v26 = vmul.f32 %v1039_v7, %v1035_v22 }
 0x4b4   : > { %v1050_v31 = vadd.f32 %v1046_v13, %v1043_v26 }
 0x4b5   : > { %v1030_v24 = vpop.f32.mrf.mxu2 }
 0x4b6   : > { %v1031_v25 = vadd.f32 %v1030_v24, %v995_v51 }
 0x4b8   : > { %v1036_v27 = vadd.f32 %v1031_v25, %v988_v23 }
 0x4ba   : > { %v1044_v28 = vmul.f32 %v1039_v7, %v1036_v27 }
 0x4bc   : > { %v1051_v32 = vadd.f32 %v1046_v13, %v1044_v28 }
 0x4be   : > { %v1053_v33 = vpack.c.bf16 %v1051_v32, %v1050_v31 }
 0x4c0   : > { %1438 = vmatmul.msk.bf16.gmra.mxu3 %vm497_vm0, %v1053_v33 }
 0x52b   : > { %v1090_v37 = vpop.f32.mrf.mxu3 }
 0x52c   : > { %v1091_v30 = vadd.f32 %v1090_v37, %v1073_v29 }
 0x52e   : > { %v1100_v40 = vmax.f32 %v1091_v30, 0.0 }
 0x533   : > { %v1092_v38 = vpop.f32.mrf.mxu3 }
 0x534   : > { %v1093_v39 = vadd.f32 %v1092_v38, %v1073_v29 }
 0x536   : > { %v1101_v41 = vmax.f32 %v1093_v39, 0.0 }
 0x538   : > { %v1104_v42 = vpack.c.bf16 %v1101_v41, %v1100_v40 }
 0x53a   : > { %1455 = vmatmul.msk.bf16.vlgmr.msrb.gmra.mxu0 %vm930_vm1, %v1104_v42 }
 0x543   : > { %v1095_v43 = vpop.f32.mrf.mxu3 }
 0x544   : > { %v1096_v44 = vadd.f32 %v1095_v43, %v1073_v29 }
 0x546   : > { %v1102_v47 = vmax.f32 %v1096_v44, 0.0 }
 0x54b   : > { %v1097_v45 = vpop.f32.mrf.mxu3 }
 0x54c   : > { %v1098_v46 = vadd.f32 %v1097_v45, %v1073_v29 }
 0x54e   : > { %v1103_v48 = vmax.f32 %v1098_v46, 0.0 }
 0x550   : > { %v1105_v49 = vpack.c.bf16 %v1103_v48, %v1102_v47 }
 0x552   : > { %1456 = vmatmul.msk.bf16.gmra.mxu0 %vm930_vm1, %v1105_v49 }
 0x5b7   : > { %v1156_v51 = vpop.f32.mrf.mxu0 }
 0x5b8   : > { %v1157_v52 = vadd.f32 %v1156_v51, %v1139_v50 }
 0x5ba   : > { %v1166_v53 = vadd.f32 %v1157_v52, %v1048_v15 }
 0x5bc   : > { %v1170_v55 = vmul.f32 %v1166_v53, %v1878_v2 }
 0x5be   : > { %v1177_v56 = vadd.f32 %v1175_v54, %v1170_v55 }
 0x5bf   : > { %v1158_v57 = vpop.f32.mrf.mxu0 }
 0x5c0   : > { %1181 = vst.msk [vmem:[%s397_s26] sm:$0xff] %vm497_vm0, %v1177_v56  ;;  %v1159_v58 = vadd.f32 %v1158_v57, %v1139_v50 }
 0x5c2   : > { %v1167_v59 = vadd.f32 %v1159_v58, %v1049_v16 }
 0x5c4   : > { %v1171_v60 = vmul.f32 %v1167_v59, %v1878_v2 }
 0x5c6   : > { %v1178_v61 = vadd.f32 %v1175_v54, %v1171_v60 }
 0x5c8   : > { %1182 = vst.msk [vmem:[%s397_s26 + $0x8] sm:$0xff] %vm497_vm0, %v1178_v61 }
 0x5cf   : > { %v1161_v62 = vpop.f32.mrf.mxu0 }
 0x5d0   : > { %v1162_v63 = vadd.f32 %v1161_v62, %v1139_v50 }
 0x5d2   : > { %v1168_v0 = vadd.f32 %v1162_v63, %v1050_v31 }
 0x5d4   : > { %v1172_v1 = vmul.f32 %v1168_v0, %v1878_v2 }
 0x5d6   : > { %v1179_v3 = vadd.f32 %v1175_v54, %v1172_v1 }
 0x5d7   : > { %v1163_v4 = vpop.f32.mrf.mxu0 }
 0x5d8   : > { %1183 = vst.msk [vmem:[%s397_s26 + $0x10] sm:$0xff] %vm497_vm0, %v1179_v3  ;;  %v1164_v5 = vadd.f32 %v1163_v4, %v1139_v50 }
 0x5da   : > { %v1169_v6 = vadd.f32 %v1164_v5, %v1051_v32 }
 0x5dc   : > { %v1173_v7 = vmul.f32 %v1169_v6, %v1878_v2 }
 0x5de   : > { %v1180_v8 = vadd.f32 %v1175_v54, %v1173_v7 }
 0x5e0   : > { %1184 = vst.msk [vmem:[%s397_s26 + $0x18] sm:$0xff] %vm497_vm0, %v1180_v8 }
 0x5e1   : > { %1612 = shalt.err (!%p1609_p3)
}
 0x5e2   : > { %s1652_s29 = smov 128   ;;  %s1653_s26 = smov 8  }
 0x5e3   : > { %1497 = dma.vmem_to_hbm [thread:$0]  (%p1747_p5), %s1199_s18, 512, %s1201_s11, %s1186_s17, %s1652_s29, %s1652_s29, %s1653_s26  }
 0x5e4 PF: > { %p1503_p4 = scmp.ge.s32.totalorder %s1647_s16, 2  ;;  %s1215_s25 = sand.u32 1, %s1635_s13  }
 0x5e5   : > { %s1216_s28 = scalar_lea.sflag [#allocation3], %s1215_s25 }
 0x5e6   : > { %p1500_p7 = pnand %p1503_p4, %p1751_p6 }
 0x5e8   : > { %p1501_p8 = pneg %p1500_p7 }
 0x5ea   : > { %1630 = dma.done.wait (%p1501_p8), %s1216_s28, 512  }
 0x5eb   : > { %1632 = vsyncadd (%p1501_p8), %s1216_s28, 4294966784  ;;  %p20_p9 = scmp.ge.s32.totalorder %s1734_s19, 4   ;;  %s1957_s13 = smov %s1639_s14 }
 0x5ec   : > { %s1958_s14 = smov %s1643_s15  ;;  %s1959_s15 = smov %s1745_s22 }
 0x5ed   : > { %s1960_s16 = smov %s1734_s19  ;;  %22 = sbr.rel (!%p20_p9) target bundleno = 3 (0x3), region = 104 }
 0x5f2   :  { %1222 = vsyncpa [#allocation3], 1 }
 0x5f3   :  { %1224 = vsyncpa [#allocation3 + $0x1], 1 }

</bundles_post_ra>
